<compile_context>
chip_gen: v7x
topology: tpu7x:2x2x1
jax: 0.10.0
libtpu: 0.0.40
codegen_flags: <defaults>
</compile_context>

<pallas_src>
import jax
import jax.numpy as jnp
from jax.experimental import pallas as pl
from jax.experimental.pallas import tpu as pltpu


def _round_up(x, m):
    return ((x + m - 1) // m) * m


def _cdiv(a, b):
    return (a + b - 1) // b


_MIN_TILE_ROWS = 1024            # don't shrink tiles below this just for megacore
_VMEM_BUDGET = 24 * 1024 * 1024  # headroom under the 32 MiB scoped-VMEM default (v7x)


def _context_merger_kernel(rw_ref, u_ref, i_ref, rv_ref, rt_ref,
                           wu_ref, wi_ref, wr_ref, b_ref, o_ref):
    # Three MXU dots with f32 accumulation (inputs may be f32 or bf16).
    acc = jnp.dot(u_ref[...], wu_ref[...], preferred_element_type=jnp.float32)
    acc = acc + jnp.dot(i_ref[...], wi_ref[...], preferred_element_type=jnp.float32)
    acc = acc + jnp.dot(rv_ref[...], wr_ref[...], preferred_element_type=jnp.float32)
    # f32 epilogue: bias + rating term are never rounded to bf16; tanh on EUP.
    acc = acc + b_ref[...].astype(jnp.float32)                       # (1, C) bcast
    acc = acc + rt_ref[...].astype(jnp.float32) * rw_ref[0]          # (TB, 1) bcast
    o_ref[...] = jnp.tanh(acc).astype(o_ref.dtype)


def context_merger(user_embed, item_embed, rating, review,
                   w_user, w_item, w_review, b_review, rating_weight,
                   *, block_b=2048, use_bf16=False, out_dtype=jnp.float32):
    """Fused ContextMerger forward.

    Weights are stored pre-transposed as [in_features, context_size].
    `rating` is [B, 1]; `rating_weight` is a scalar / shape-(1,) parameter.
    """
    B = user_embed.shape[0]
    U, C = w_user.shape
    I = w_item.shape[0]
    V = w_review.shape[0]

    in_dtype = jnp.bfloat16 if use_bf16 else jnp.float32
    ue = jnp.asarray(user_embed, in_dtype)
    ie = jnp.asarray(item_embed, in_dtype)
    rv = jnp.asarray(review, in_dtype)
    wu = jnp.asarray(w_user, in_dtype)
    wi = jnp.asarray(w_item, in_dtype)
    wr = jnp.asarray(w_review, in_dtype)
    # Bias, rating and rating_weight always stay f32 (added in the f32 epilogue).
    br = jnp.asarray(b_review, jnp.float32).reshape(1, C)
    rt = jnp.asarray(rating, jnp.float32).reshape(B, 1)
    rw = jnp.asarray(rating_weight, jnp.float32).reshape(1)

    # ---- batch-tile selection --------------------------------------------
    in_bytes = jnp.dtype(in_dtype).itemsize
    out_bytes = jnp.dtype(out_dtype).itemsize
    row_bytes = (U + I + V) * in_bytes + 1 * 4 + C * out_bytes       # per batch row
    w_bytes = ((U + I + V) * in_bytes + 1 * 4) * C                   # resident weights
    # Cap the tile so double-buffered activations + output fit the VMEM budget.
    tb_cap = max(8, ((_VMEM_BUDGET - 2 * w_bytes) // (2 * row_bytes)) // 8 * 8)
    block_b = max(8, min(block_b, tb_cap))

    num_tiles = _cdiv(B, block_b)
    if num_tiles == 1 and B >= 2 * _MIN_TILE_ROWS:
        num_tiles = 2                       # v7x: give the second TensorCore work
    tb = _round_up(_cdiv(B, num_tiles), 8)  # minimal tail waste (<= 7 rows padding)
    num_tiles = _cdiv(B, tb)                # ragged last block handled by Pallas

    cost = pl.CostEstimate(
        flops=2 * B * (U + I + V) * C,
        transcendentals=B * C,
        bytes_accessed=B * row_bytes + w_bytes,
    )

    out = pl.pallas_call(
        _context_merger_kernel,
        out_shape=jax.ShapeDtypeStruct((B, C), out_dtype),
        grid=(num_tiles,),
        in_specs=[
            pl.BlockSpec(memory_space=pltpu.MemorySpace.SMEM),   # rating_weight (1,)
            pl.BlockSpec((tb, U), lambda b: (b, 0)),             # user_embed
            pl.BlockSpec((tb, I), lambda b: (b, 0)),             # item_embed
            pl.BlockSpec((tb, V), lambda b: (b, 0)),             # review
            pl.BlockSpec((tb, 1), lambda b: (b, 0)),             # rating
            pl.BlockSpec((U, C), lambda b: (0, 0)),              # w_user  (resident)
            pl.BlockSpec((I, C), lambda b: (0, 0)),              # w_item  (resident)
            pl.BlockSpec((V, C), lambda b: (0, 0)),              # w_review(resident)
            pl.BlockSpec((1, C), lambda b: (0, 0)),              # b_review(resident)
        ],
        out_specs=pl.BlockSpec((tb, C), lambda b: (b, 0)),
        compiler_params=pltpu.CompilerParams(
            dimension_semantics=("parallel",),   # v7x: shard batch over 2 TCs
        ),
        cost_estimate=cost,
    )(rw, ue, ie, rv, rt, wu, wi, wr, br)

    return out


if __name__ == "__main__":
    # Small shapes consistent with the module's constructor.
    B = 8                 # batch
    U = 32                # user_latent_factors_count
    I = 16                # item_latent_factors_count
    V = 64                # vocabulary_size
    C = 128               # context_size

    key = jax.random.PRNGKey(0)
    k = jax.random.split(key, 8)

    # PyTorch-Linear-like uniform init, stored transposed as [in, out].
    w_user = jax.random.uniform(k[0], (U, C), jnp.float32,
                                -1.0 / U ** 0.5, 1.0 / U ** 0.5)
    w_item = jax.random.uniform(k[1], (I, C), jnp.float32,
                                -1.0 / I ** 0.5, 1.0 / I ** 0.5)
    w_review = jax.random.uniform(k[2], (V, C), jnp.float32,
                                  -1.0 / V ** 0.5, 1.0 / V ** 0.5)
    b_review = jax.random.uniform(k[3], (1, C), jnp.float32,
                                  -1.0 / V ** 0.5, 1.0 / V ** 0.5)
    rating_weight = jax.random.normal(k[4], (1,), jnp.float32)

    user_embed = jax.random.normal(k[5], (B, U), jnp.float32)
    item_embed = jax.random.normal(k[6], (B, I), jnp.float32)
    review = jax.random.normal(k[7], (B, V), jnp.float32)
    rating = jnp.arange(1, B + 1, dtype=jnp.float32).reshape(B, 1)

    def ref_fn(ue, ie, rt, rv):
        return jnp.tanh(ue @ w_user + ie @ w_item
                        + rating_weight[0] * rt + rv @ w_review + b_review)

    ref = ref_fn(user_embed, item_embed, rating, review)

    # f32 path.
    out = jax.block_until_ready(
        context_merger(user_embed, item_embed, rating, review,
                       w_user, w_item, w_review, b_review, rating_weight))
    assert out.shape == (B, C)
    assert jnp.allclose(out, ref, atol=1e-5, rtol=1e-5), "mismatch vs reference"

    # Exercise multiple tiles + a ragged last block (B not a multiple of tile).
    B2 = 20
    k2 = jax.random.split(jax.random.PRNGKey(1), 4)
    ue2 = jax.random.normal(k2[0], (B2, U), jnp.float32)
    ie2 = jax.random.normal(k2[1], (B2, I), jnp.float32)
    rv2 = jax.random.normal(k2[2], (B2, V), jnp.float32)
    rt2 = jax.random.uniform(k2[3], (B2, 1), jnp.float32, 1.0, 5.0)
    ref2 = ref_fn(ue2, ie2, rt2, rv2)
    out2 = jax.block_until_ready(
        context_merger(ue2, ie2, rt2, rv2, w_user, w_item, w_review,
                       b_review, rating_weight, block_b=8))
    assert out2.shape == (B2, C)
    assert jnp.allclose(out2, ref2, atol=1e-5, rtol=1e-5), "ragged grid mismatch"

    # bf16 MXU-feed path: bias + rating stay in the f32 epilogue, so error is
    # only bf16 input/weight rounding of the matmuls.
    out_bf16 = jax.block_until_ready(
        context_merger(user_embed, item_embed, rating, review,
                       w_user, w_item, w_review, b_review, rating_weight,
                       use_bf16=True))
    assert jnp.allclose(out_bf16, ref, atol=5e-2, rtol=5e-2), "bf16 path mismatch"

    # bf16 output path (halves writeback traffic); tanh output is in [-1, 1].
    out_obf = jax.block_until_ready(
        context_merger(user_embed, item_embed, rating, review,
                       w_user, w_item, w_review, b_review, rating_weight,
                       out_dtype=jnp.bfloat16))
    assert out_obf.dtype == jnp.bfloat16
    assert jnp.allclose(out_obf.astype(jnp.float32), ref,
                        atol=1e-2, rtol=1e-2), "bf16 output mismatch"

    print("KERNEL_OK")
</pallas_src>

<mosaic_0001>
module attributes {stable_mosaic.version = 11 : i64} {
  func.func @_context_merger_kernel(%arg0: i32, %arg1: memref<1xf32, #tpu.memory_space<smem>>, %arg2: memref<8x32xf32, #tpu.memory_space<vmem>>, %arg3: memref<8x16xf32, #tpu.memory_space<vmem>>, %arg4: memref<8x64xf32, #tpu.memory_space<vmem>>, %arg5: memref<8x1xf32, #tpu.memory_space<vmem>>, %arg6: memref<32x128xf32, #tpu.memory_space<vmem>>, %arg7: memref<16x128xf32, #tpu.memory_space<vmem>>, %arg8: memref<64x128xf32, #tpu.memory_space<vmem>>, %arg9: memref<1x128xf32, #tpu.memory_space<vmem>>, %arg10: memref<8x128xf32, #tpu.memory_space<vmem>>) attributes {dimension_semantics = [#tpu.dimension_semantics<parallel>], iteration_bounds = array<i64: 1>, scalar_prefetch = 0 : i64, scratch_operands = 0 : i64, tpu.core_type = #tpu.core_type<tc>, window_params = [{transform_indices = @transform_0, window_bounds = array<i64: 1>}, {transform_indices = @transform_1, window_bounds = array<i64: 8, 32>}, {transform_indices = @transform_2, window_bounds = array<i64: 8, 16>}, {transform_indices = @transform_3, window_bounds = array<i64: 8, 64>}, {transform_indices = @transform_4, window_bounds = array<i64: 8, 1>}, {pipeline_mode = #tpu.pipeline_mode<synchronous>, transform_indices = @transform_5, window_bounds = array<i64: 32, 128>}, {pipeline_mode = #tpu.pipeline_mode<synchronous>, transform_indices = @transform_6, window_bounds = array<i64: 16, 128>}, {pipeline_mode = #tpu.pipeline_mode<synchronous>, transform_indices = @transform_7, window_bounds = array<i64: 64, 128>}, {pipeline_mode = #tpu.pipeline_mode<synchronous>, transform_indices = @transform_8, window_bounds = array<i64: 1, 128>}, {transform_indices = @transform_9, window_bounds = array<i64: 8, 128>}]} {
    %c0 = arith.constant 0 : index
    %c0_0 = arith.constant 0 : index
    %0 = vector.load %arg2[%c0, %c0_0] : memref<8x32xf32, #tpu.memory_space<vmem>>, vector<8x32xf32>
    %c0_1 = arith.constant 0 : index
    %c0_2 = arith.constant 0 : index
    %1 = vector.load %arg6[%c0_1, %c0_2] : memref<32x128xf32, #tpu.memory_space<vmem>>, vector<32x128xf32>
    %cst = arith.constant dense<0.000000e+00> : vector<8x128xf32>
    %2 = tpu.matmul %0, %1, %cst {dimension_numbers = #tpu.dot_dimension_numbers<[1], [0], [0], [1], [0, 0, 1, 1], [], []>} : vector<8x32xf32>, vector<32x128xf32>, vector<8x128xf32> -> vector<8x128xf32>
    %c0_3 = arith.constant 0 : index
    %c0_4 = arith.constant 0 : index
    %3 = vector.load %arg3[%c0_3, %c0_4] : memref<8x16xf32, #tpu.memory_space<vmem>>, vector<8x16xf32>
    %c0_5 = arith.constant 0 : index
    %c0_6 = arith.constant 0 : index
    %4 = vector.load %arg7[%c0_5, %c0_6] : memref<16x128xf32, #tpu.memory_space<vmem>>, vector<16x128xf32>
    %cst_7 = arith.constant dense<0.000000e+00> : vector<8x128xf32>
    %5 = tpu.matmul %3, %4, %cst_7 {dimension_numbers = #tpu.dot_dimension_numbers<[1], [0], [0], [1], [0, 0, 1, 1], [], []>} : vector<8x16xf32>, vector<16x128xf32>, vector<8x128xf32> -> vector<8x128xf32>
    %6 = arith.addf %2, %5 : vector<8x128xf32>
    %c0_8 = arith.constant 0 : index
    %c0_9 = arith.constant 0 : index
    %7 = vector.load %arg4[%c0_8, %c0_9] : memref<8x64xf32, #tpu.memory_space<vmem>>, vector<8x64xf32>
    %c0_10 = arith.constant 0 : index
    %c0_11 = arith.constant 0 : index
    %8 = vector.load %arg8[%c0_10, %c0_11] : memref<64x128xf32, #tpu.memory_space<vmem>>, vector<64x128xf32>
    %cst_12 = arith.constant dense<0.000000e+00> : vector<8x128xf32>
    %9 = tpu.matmul %7, %8, %cst_12 {dimension_numbers = #tpu.dot_dimension_numbers<[1], [0], [0], [1], [0, 0, 1, 1], [], []>} : vector<8x64xf32>, vector<64x128xf32>, vector<8x128xf32> -> vector<8x128xf32>
    %10 = arith.addf %6, %9 : vector<8x128xf32>
    %c0_13 = arith.constant 0 : index
    %c0_14 = arith.constant 0 : index
    %11 = vector.load %arg9[%c0_13, %c0_14] : memref<1x128xf32, #tpu.memory_space<vmem>>, vector<1x128xf32>
    %12 = vector.broadcast %11 : vector<1x128xf32> to vector<8x128xf32>
    %13 = arith.addf %10, %12 : vector<8x128xf32>
    %c0_15 = arith.constant 0 : index
    %c0_16 = arith.constant 0 : index
    %14 = vector.load %arg5[%c0_15, %c0_16] : memref<8x1xf32, #tpu.memory_space<vmem>>, vector<8x1xf32>
    %c0_17 = arith.constant 0 : index
    %15 = memref.load %arg1[%c0_17] : memref<1xf32, #tpu.memory_space<smem>>
    %16 = vector.broadcast %15 : f32 to vector<8x1xf32>
    %17 = arith.mulf %14, %16 : vector<8x1xf32>
    %18 = vector.broadcast %17 : vector<8x1xf32> to vector<8x128xf32>
    %19 = arith.addf %13, %18 : vector<8x128xf32>
    %20 = math.tanh %19 : vector<8x128xf32>
    %c0_18 = arith.constant 0 : index
    %c0_19 = arith.constant 0 : index
    %21 = vector.load %arg10[%c0_18, %c0_19] : memref<8x128xf32, #tpu.memory_space<vmem>>, vector<8x128xf32>
    tpu.vector_store %arg10[%c0_18, %c0_19], %20 {strides = array<i32>} : memref<8x128xf32, #tpu.memory_space<vmem>>, vector<8x128xf32>,
    return
  }
  func.func @transform_0(%arg0: i32) -> i32 {
    %c0_i32 = arith.constant 0 : i32
    %c0_i32_0 = arith.constant 0 : i32
    return %c0_i32 : i32
  }
  func.func @transform_1(%arg0: i32) -> (i32, i32) {
    %c0_i32 = arith.constant 0 : i32
    %c0_i32_0 = arith.constant 0 : i32
    return %arg0, %c0_i32 : i32, i32
  }
  func.func @transform_2(%arg0: i32) -> (i32, i32) {
    %c0_i32 = arith.constant 0 : i32
    %c0_i32_0 = arith.constant 0 : i32
    return %arg0, %c0_i32 : i32, i32
  }
  func.func @transform_3(%arg0: i32) -> (i32, i32) {
    %c0_i32 = arith.constant 0 : i32
    %c0_i32_0 = arith.constant 0 : i32
    return %arg0, %c0_i32 : i32, i32
  }
  func.func @transform_4(%arg0: i32) -> (i32, i32) {
    %c0_i32 = arith.constant 0 : i32
    %c0_i32_0 = arith.constant 0 : i32
    return %arg0, %c0_i32 : i32, i32
  }
  func.func @transform_5(%arg0: i32) -> (i32, i32) {
    %c0_i32 = arith.constant 0 : i32
    %c0_i32_0 = arith.constant 0 : i32
    %c0_i32_1 = arith.constant 0 : i32
    return %c0_i32, %c0_i32_0 : i32, i32
  }
  func.func @transform_6(%arg0: i32) -> (i32, i32) {
    %c0_i32 = arith.constant 0 : i32
    %c0_i32_0 = arith.constant 0 : i32
    %c0_i32_1 = arith.constant 0 : i32
    return %c0_i32, %c0_i32_0 : i32, i32
  }
  func.func @transform_7(%arg0: i32) -> (i32, i32) {
    %c0_i32 = arith.constant 0 : i32
    %c0_i32_0 = arith.constant 0 : i32
    %c0_i32_1 = arith.constant 0 : i32
    return %c0_i32, %c0_i32_0 : i32, i32
  }
  func.func @transform_8(%arg0: i32) -> (i32, i32) {
    %c0_i32 = arith.constant 0 : i32
    %c0_i32_0 = arith.constant 0 : i32
    %c0_i32_1 = arith.constant 0 : i32
    return %c0_i32, %c0_i32_0 : i32, i32
  }
  func.func @transform_9(%arg0: i32) -> (i32, i32) {
    %c0_i32 = arith.constant 0 : i32
    %c0_i32_0 = arith.constant 0 : i32
    return %arg0, %c0_i32 : i32, i32
  }
}

</mosaic_0001>

<bundles_post_ra>
// kernel: tpu_custom_call.1
= control target key start
LH: loop header
LB: loop body
LE: loop exit
PB: predicated region body
PF: predicated region fallthrough
CT: control target
= control target key end

     0   :  { %15 = vsyncpa [#allocation4], 0  ;;  %s715_s0 = inlined_call_operand.<no memory space> [shape: f32[1], index: 0, kind: input, shape index: {}]   ;;  %s716_s1 = inlined_call_operand.vmem [shape: f32[8,32], index: 1, kind: input, shape index: {}]   ;;  %s717_s2 = inlined_call_operand.hbm [shape: f32[8,16], index: 2, kind: input, shape index: {}]   ;;  %s718_s3 = inlined_call_operand.hbm [shape: f32[8,64], index: 3, kind: input, shape index: {}]   ;;  %s719_s4 = inlined_call_operand.vmem [shape: f32[8,1], index: 4, kind: input, shape index: {}]   ;;  %s720_s5 = inlined_call_operand.hbm [shape: f32[32,128], index: 5, kind: input, shape index: {}]   ;;  %s721_s6 = inlined_call_operand.vmem [shape: f32[16,128], index: 6, kind: input, shape index: {}]   ;;  %s722_s7 = inlined_call_operand.hbm [shape: f32[64,128], index: 7, kind: input, shape index: {}]   ;;  %s723_s8 = inlined_call_operand.vmem [shape: f32[1,128], index: 8, kind: input, shape index: {}]   ;;  %s724_s9 = inlined_call_operand.hbm [shape: f32[8,128], index: 9, kind: output, shape index: {}]  }
   0x1   :  { %16 = vsyncpa [#allocation7], 0 }
   0x2   :  { %17 = vsyncpa [#allocation10], 0 }
   0x3   :  { %18 = vsyncpa [#allocation5], 0  ;;  %s573_s30 = smov [#allocation6]   ;;  %s574_s11 = smov [#allocation3]  }
   0x4   :  { %s39_s10 = sshll.u32 %s573_s30, 4  ;;  %s29_s12 = sshll.u32 %s574_s11, 4  ;;  %s40_s10 = int_to_ptr.vmem [resolvable:$true] %s39_s10  ;;  %s30_s12 = int_to_ptr.vmem [resolvable:$true] %s29_s12 }
   0x5   :  { %s455_s15 = scalar_lea.hbm %s718_s3, 128 }
   0x6   :  { %p456_p0 = scmp.ne.s32.totalorder %s718_s3, %s455_s15  ;;  %p459_p1 = scmp.lt.u32.totalorder %s455_s15, %s718_s3 }
   0x8   :  { %p461_p2 = pnand %p459_p1, %p456_p0 }
   0xa   :  { %464 = shalt.err (!%p461_p2)
}
   0xb   :  { %s465_s20 = scalar_lea.vmem %s40_s10, 128  ;;  %p470_p4 = scmp.lt.s32.totalorder %s40_s10, %s40_s10 }
   0xc   :  { %p466_p3 = scmp.ne.s32.totalorder %s40_s10, %s465_s20  ;;  %p471_p5 = scmp.lt.s32.totalorder %s465_s20, %s465_s20 }
   0xe   :  { %p472_p6 = por %p471_p5, %p470_p4 }
  0x10   :  { %p473_p7 = pnand %p472_p6, %p466_p3 }
  0x12   :  { %476 = shalt.err (!%p473_p7)
}
  0x13   :  { %42 = dma.hbm_to_vmem [thread:$0]  %s718_s3, 128, %s40_s10, [#allocation7]  }
  0x14   :  { %s477_s25 = scalar_lea.hbm %s717_s2, 128 }
  0x15   :  { %p478_p8 = scmp.ne.s32.totalorder %s717_s2, %s477_s25  ;;  %p481_p9 = scmp.lt.u32.totalorder %s477_s25, %s717_s2 }
  0x17   :  { %p483_p10 = pnand %p481_p9, %p478_p8 }
  0x19   :  { %486 = shalt.err (!%p483_p10)
}
  0x1a   :  { %s487_s30 = scalar_lea.vmem %s30_s12, 128  ;;  %p492_p12 = scmp.lt.s32.totalorder %s30_s12, %s30_s12 }
  0x1b   :  { %p488_p11 = scmp.ne.s32.totalorder %s30_s12, %s487_s30  ;;  %p493_p13 = scmp.lt.s32.totalorder %s487_s30, %s487_s30 }
  0x1d   :  { %p494_p0 = por %p493_p13, %p492_p12 }
  0x1f   :  { %p495_p1 = pnand %p494_p0, %p488_p11 }
  0x21   :  { %498 = shalt.err (!%p495_p1)
}
  0x22   :  { %32 = dma.hbm_to_vmem [thread:$0]  %s717_s2, 128, %s30_s12, [#allocation4]  }
  0x23   :  { %s575_s11 = smov [#allocation8]   ;;  %s499_s16 = scalar_lea.hbm %s720_s5, 512 }
  0x24   :  { %s50_s13 = sshll.u32 %s575_s11, 4  ;;  %p500_p2 = scmp.ne.s32.totalorder %s720_s5, %s499_s16  ;;  %s51_s13 = int_to_ptr.vmem [resolvable:$true] %s50_s13 }
  0x25   :  { %p503_p3 = scmp.lt.u32.totalorder %s499_s16, %s720_s5 }
  0x27   :  { %p505_p4 = pnand %p503_p3, %p500_p2 }
  0x29   :  { %508 = shalt.err (!%p505_p4)
}
  0x2a   :  { %s509_s21 = scalar_lea.vmem %s51_s13, 512  ;;  %p514_p6 = scmp.lt.s32.totalorder %s51_s13, %s51_s13 }
  0x2b   :  { %p510_p5 = scmp.ne.s32.totalorder %s51_s13, %s509_s21  ;;  %p515_p7 = scmp.lt.s32.totalorder %s509_s21, %s509_s21 }
  0x2d   :  { %p516_p8 = por %p515_p7, %p514_p6 }
  0x2f   :  { %p517_p9 = pnand %p516_p8, %p510_p5 }
  0x31   :  { %520 = shalt.err (!%p517_p9)
}
  0x32   :  { %s576_s2 = smov 128   ;;  %s577_s12 = smov 8  }
  0x33   :  { %56 = dma.hbm_to_vmem [thread:$0]  %s720_s5, 512, %s51_s13, [#allocation7], %s576_s2, %s576_s2, %s577_s12  }
  0x34   :  { %s578_s24 = smov [#allocation9]   ;;  %s521_s28 = scalar_lea.hbm %s722_s7, 1024 }
  0x35   :  { %s64_s25 = sshll.u32 %s578_s24, 4  ;;  %p522_p10 = scmp.ne.s32.totalorder %s722_s7, %s521_s28  ;;  %s65_s25 = int_to_ptr.vmem [resolvable:$true] %s64_s25 }
  0x36   :  { %p525_p11 = scmp.lt.u32.totalorder %s521_s28, %s722_s7 }
  0x38   :  { %p527_p12 = pnand %p525_p11, %p522_p10 }
  0x3a   :  { %530 = shalt.err (!%p527_p12)
}
  0x3b   :  { %s531_s11 = scalar_lea.vmem %s65_s25, 1024  ;;  %p536_p0 = scmp.lt.s32.totalorder %s65_s25, %s65_s25 }
  0x3c   :  { %p532_p13 = scmp.ne.s32.totalorder %s65_s25, %s531_s11  ;;  %p537_p1 = scmp.lt.s32.totalorder %s531_s11, %s531_s11 }
  0x3e   :  { %p538_p2 = por %p537_p1, %p536_p0 }
  0x40   :  { %p539_p3 = pnand %p538_p2, %p532_p13 }
  0x42   :  { %542 = shalt.err (!%p539_p3)
}
  0x43   :  { %70 = dma.hbm_to_vmem [thread:$0]  %s722_s7, 1024, %s65_s25, [#allocation10], %s576_s2, %s576_s2, %s577_s12  }
  0x44   :  { %565 = dma.done.wait [#allocation4], 128  }
  0x45   :  { %566 = vsyncadd [#allocation4], 4294967168 }
  0x46   :  { %567 = dma.done.wait [#allocation7], 640  }
  0x47   :  { %568 = vsyncadd [#allocation7], 4294966656 }
  0x48   :  { %569 = dma.done.wait [#allocation10], 1024  }
  0x49   :  { %570 = vsyncadd [#allocation10], 4294966272  ;;  %v579_v0 = vmov 0.0|0.0   ;;  %vm580_vm0 = vmmov 0   ;;  %v581_v1 = vmov 0.0   ;;  %v582_v2 = vmov 0  }
  0x4a   :  { %420 = vmatprep.subr.bf16.mxu1 %v579_v0  ;;  %429 = vmatprep.subr.bf16.mxu0 %v579_v0  ;;  %v91_v3 = vld [vmem:[%s721_s6] sm:$0xff]  ;;  %v92_v4 = vld [vmem:[%s721_s6 + $0x8] sm:$0xff]  ;;  %v242_v5 = vld [vmem:[#allocation9] sm:$0xff]  ;;  %vm93_vm1 = vcmask 130048   ;;  %v335_v15 = vstv %s715_s0  ;;  %vm167_vm2 = vcmask 261120   ;;  %vm250_vm3 = vcmask 523264  }
  0x4b   :  { %387 = vmatprep.mubr.msk.f32.mxu1 %vm580_vm0, %v581_v1  ;;  %417 = vmatprep.mubr.msk.f32.mxu0 %vm580_vm0, %v581_v1  ;;  %v421_v6 = vpack.c.bf16 %v92_v4, %v91_v3  ;;  %v243_v7 = vld [vmem:[#allocation9 + $0x8] sm:$0xff]  ;;  %v86_v8 = vld [vmem:[#allocation8] sm:$0xff]  ;;  %v244_v11 = vld [vmem:[#allocation9 + $0x10] sm:$0xff] }
  0x4c   :  { %452 = vset.pattern.permute.xlu0 %v582_v2  ;;  %v430_v9 = vpack.c.bf16 %v243_v7, %v242_v5  ;;  %v87_v10 = vld [vmem:[#allocation8 + $0x8] sm:$0xff]  ;;  %v245_v12 = vld [vmem:[#allocation9 + $0x18] sm:$0xff]  ;;  %v90_v13 = vld [vmem:[#allocation3] sm:$0xff] }
  0x4d   :  { %422 = vmatpush3.bf16.msra.mxu1 %v421_v6  ;;  %v424_v14 = vpack.c.bf16 %v87_v10, %v86_v8  ;;  %v433_v16 = vpack.c.bf16 %v245_v12, %v244_v11  ;;  %v88_v17 = vld [vmem:[#allocation8 + $0x10] sm:$0xff]  ;;  %v89_v18 = vld [vmem:[#allocation8 + $0x18] sm:$0xff]  ;;  %v246_v19 = vld [vmem:[#allocation9 + $0x20] sm:$0xff] }
  0x4e   :  { %431 = vmatpush3.bf16.msra.mxu0 %v430_v9  ;;  %423 = vmatprep.subr.bf16.mxu1 %v579_v0  ;;  %v247_v20 = vld [vmem:[#allocation9 + $0x28] sm:$0xff]  ;;  %v333_v21 = vld [vmem:[%s719_s4] sm:$0xff]  ;;  %v427_v23 = vpack.c.bf16 %v89_v18, %v88_v17  ;;  %v249_v26 = vld [vmem:[#allocation9 + $0x38] sm:$0xff] }
  0x4f   :  { %432 = vmatprep.subr.bf16.mxu0 %v579_v0  ;;  %v336_v22 = vmul.f32 %v335_v15, %v333_v21  ;;  %v436_v24 = vpack.c.bf16 %v247_v20, %v246_v19  ;;  %v248_v25 = vld [vmem:[#allocation9 + $0x30] sm:$0xff]  ;;  %v241_v29 = vld [vmem:[#allocation6] sm:$0xff] }
  0x50   :  { %388 = vmatmul.mubr.msk.f32.vlgmr.msra.gmra.mrb[0].mxu1 %vm93_vm1, %v90_v13  ;;  %v85_v27 = vld [vmem:[%s716_s1] sm:$0xff]  ;;  %v439_v28 = vpack.c.bf16 %v249_v26, %v248_v25  ;;  %s583_s1 = smov [#allocation11]  }
  0x51   :  { %425 = vmatpush3.bf16.msra.mxu1 %v424_v14  ;;  %398 = vmatprep.mubr.msk.f32.mxu1 %vm580_vm0, %v581_v1  ;;  %v365_v36 = vld [vmem:[%s723_s8] ss:$0 sm:$0xff]  ;;  %s351_s2 = sshll.u32 %s583_s1, 4  ;;  %s352_s2 = int_to_ptr.vmem [resolvable:$true] %s351_s2 }
  0x52   :  { %434 = vmatpush3.bf16.msra.mxu0 %v433_v16  ;;  %426 = vmatprep.subr.bf16.mxu1 %v579_v0  ;;  %s543_s12 = scalar_lea.vmem %s352_s2, 128  ;;  %p548_p5 = scmp.lt.s32.totalorder %s352_s2, %s352_s2 }
  0x53   :  { %435 = vmatprep.subr.bf16.mxu0 %v579_v0  ;;  %339 = vperm.xlu0 %452, %v336_v22   ;;  %p544_p4 = scmp.ne.s32.totalorder %s352_s2, %s543_s12  ;;  %p549_p6 = scmp.lt.s32.totalorder %s543_s12, %s543_s12 }
  0x55   :  { %428 = vmatpush3.bf16.msra.mxu1 %v427_v23  ;;  %p550_p7 = por %p549_p6, %p548_p5 }
  0x56   :  { %437 = vmatpush3.bf16.msra.mxu0 %v436_v24 }
  0x57   :  { %438 = vmatprep.subr.bf16.mxu0 %v579_v0  ;;  %p551_p8 = pnand %p550_p7, %p544_p4 }
  0x58   :  { %399 = vmatmul.mubr.msk.f32.vlgmr.msra.gmra.mrb[2].mxu1 %vm167_vm2, %v85_v27 }
  0x5a   :  { %440 = vmatpush3.bf16.msra.mxu0 %v439_v28 }
  0x5d   :  { %418 = vmatmul.mubr.msk.f32.vlgmr.msra.gmra.mrb[0].mxu0 %vm250_vm3, %v241_v29 }
  0xd2   :  { %v340_v39 = vpop.permute.xlu0 %339 }
 0x123   :  { %v163_v30 = vpop.f32.mrb[0].mxu1 }
 0x124   :  { %v389_v31 = vpop.f32.mrb[1].mxu1 }
 0x12b   :  { %v237_v32 = vpop.f32.mrb[2].mxu1 }
 0x12c   :  { %v238_v33 = vadd.f32 %v237_v32, %v163_v30  ;;  %v400_v34 = vpop.f32.mrb[3].mxu1 }
 0x130   :  { %v320_v35 = vpop.f32.mrb[0].mxu0 }
 0x131   :  { %v324_v37 = vadd.f32 %v320_v35, %v238_v33  ;;  %v419_v38 = vpop.f32.mrb[1].mxu0 }
 0x133   :  { %v332_v40 = vadd.f32 %v365_v36, %v324_v37 }
 0x135   :  { %v342_v41 = vadd.f32 %v340_v39, %v332_v40 }
 0x137   :  { %453 = vtanh.f32 %v342_v41 }
 0x141   :  { %v454_v42 = vpop.eup %453 }
 0x142   :  { %344 = vst [vmem:[#allocation11] sm:$0xff] %v454_v42 }
 0x143   :  { %554 = shalt.err (!%p551_p8)
}
 0x144   :  { %s555_s23 = scalar_lea.hbm %s724_s9, 128 }
 0x145   :  { %p556_p9 = scmp.ne.s32.totalorder %s724_s9, %s555_s23  ;;  %p559_p10 = scmp.lt.u32.totalorder %s555_s23, %s724_s9 }
 0x147   :  { %p561_p11 = pnand %p559_p10, %p556_p9 }
 0x149   :  { %564 = shalt.err (!%p561_p11)
}
 0x14a   :  { %354 = dma.vmem_to_hbm [thread:$0]  %s352_s2, 128, %s724_s9, [#allocation5]  }
 0x14b   :  { %571 = dma.done.wait [#allocation5], 128  }
 0x14c   :  { %572 = vsyncadd [#allocation5], 4294967168 }
 0x14d   :  { %358 = vsyncpa [#allocation4], 1 }
 0x14e   :  { %359 = vsyncpa [#allocation7], 1 }
 0x14f   :  { %360 = vsyncpa [#allocation10], 1 }
 0x150   :  { %361 = vsyncpa [#allocation5], 1 }

</bundles_post_ra>
